<compile_context>
chip_gen: v7x
topology: tpu7x:2x2x1
jax: 0.10.0
libtpu: 0.0.40
codegen_flags: <defaults>
</compile_context>

<pallas_src>
import functools

import jax
import jax.numpy as jnp
from jax.experimental import pallas as pl
from jax.experimental.pallas import tpu as pltpu


def _charbonnier_kernel(x_ref, y_ref, o_ref, acc_ref, *, eps, rows, lanes,
                        tile_r, tiles_per_shard, needs_mask):
    s = pl.program_id(0)          # shard axis ("parallel"; 2-TC split on v7x)
    i = pl.program_id(1)          # streaming step within the shard

    @pl.when(i == 0)
    def _():
        acc_ref[...] = jnp.zeros_like(acc_ref)

    x = x_ref[...].astype(jnp.float32)            # (tile_r, lanes)
    y = y_ref[...].astype(jnp.float32)
    diff = x - y
    vals = jnp.sqrt(diff * diff + jnp.float32(eps))

    def _fold(v):
        # VPU-only fold into the (8, lanes) f32 accumulator; the single
        # cross-lane (XLU) reduce is deferred to the last grid step.
        acc_ref[...] += jnp.sum(v.reshape(tile_r // 8, 8, lanes), axis=0)

    if not needs_mask:
        # Grid coverage exactly equals the real rows: no mask code at all.
        _fold(vals)
    else:
        block_row0 = (s * tiles_per_shard + i) * tile_r

        @pl.when(block_row0 + tile_r <= rows)      # interior block: no mask work
        def _():
            _fold(vals)

        @pl.when(block_row0 + tile_r > rows)       # boundary / clamped block
        def _():
            rows_left = rows - block_row0          # block-local scalar bound
            rid = jax.lax.broadcasted_iota(jnp.int32, (tile_r, lanes), 0)
            _fold(jnp.where(rid < rows_left, vals, 0.0))

    @pl.when(i == pl.num_programs(1) - 1)
    def _():
        o_ref[0, 0] = jnp.sum(acc_ref[...])


def _choose_lanes(shape, max_lanes=2048):
    """Largest trailing-suffix product that is a multiple of 128 (<= max_lanes)."""
    prod, best = 1, 0
    for d in reversed(shape):
        prod *= d
        if prod % 128 == 0 and prod <= max_lanes:
            best = prod
    return best


def _default_num_shards():
    # Each v7x TensorCore has its own HBM path -> worth splitting the stream.
    # v5e/v6e have a single TC: a second shard is pure overhead.
    try:
        kind = jax.devices()[0].device_kind.lower()
    except Exception:
        return 1
    return 2 if ("v7" in kind or "7x" in kind) else 1


def charbonnier_loss(x, y, eps=1e-3, *, target_block_bytes=4 << 20,
                     num_shards=None):
    """Pallas equivalent of CharbonnierLoss(eps)(x, y) = sum(sqrt((x-y)^2 + eps))."""
    assert x.shape == y.shape, "x and y must have the same shape"
    n_elems = int(x.size)
    eps = float(eps)
    dtype_bytes = jnp.dtype(x.dtype).itemsize
    # Sublane packing of the dtype: 8 rows (f32), 16 (bf16/f16), 32 (int8/fp8).
    row_align = 8 * max(1, 4 // dtype_bytes)
    if num_shards is None:
        num_shards = _default_num_shards()

    def _plain(a, b):
        d = a.astype(jnp.float32) - b.astype(jnp.float32)
        return jnp.sum(jnp.sqrt(d * d + jnp.float32(eps)))

    # ---- lane-dense 2-D view without copying the whole tensor ---------------
    lanes = _choose_lanes(x.shape)
    if lanes:
        # Trailing suffix of dims is a multiple of 128: pure dim-merge reshape,
        # divides n_elems exactly, no tail, no pad.
        n_main = n_elems
        x2 = x.reshape(-1, lanes)
        y2 = y.reshape(-1, lanes)
        x_tail = y_tail = None
    else:
        # Ragged shape: stream the first rows*lanes elements through the
        # kernel; the (< lanes)-element remainder is summed in plain JAX.
        lanes = 512
        n_main = (n_elems // lanes) * lanes
        xf = x.reshape(-1)
        yf = y.reshape(-1)
        x_tail, y_tail = xf[n_main:], yf[n_main:]
        if n_main == 0:       # smaller than one lane row: nothing to stream
            return _plain(x_tail, y_tail)
        x2 = xf[:n_main].reshape(-1, lanes)
        y2 = yf[:n_main].reshape(-1, lanes)

    rows = n_main // lanes

    # ---- tiling --------------------------------------------------------------
    tile_r = max(row_align,
                 (target_block_bytes // (lanes * dtype_bytes)) // row_align * row_align)
    if rows < tile_r:
        # Small input (< ~one block of data): shrink the block and pad the slab
        # by < row_align rows so the single block is fully in-bounds (tiny copy,
        # only ever taken for tiny inputs).
        tile_r = pl.cdiv(rows, row_align) * row_align
        if tile_r != rows:
            x2 = jnp.pad(x2, ((0, tile_r - rows), (0, 0)))
            y2 = jnp.pad(y2, ((0, tile_r - rows), (0, 0)))

    tiles_total = pl.cdiv(rows, tile_r)
    num_shards = max(1, min(int(num_shards), tiles_total))
    tiles_per_shard = pl.cdiv(tiles_total, num_shards)
    over = num_shards * tiles_per_shard > tiles_total
    # Mask code is compiled in only if some grid step can cover rows >= `rows`
    # (partial boundary block, padded slab rows, or clamped over-coverage blocks).
    needs_mask = num_shards * tiles_per_shard * tile_r != rows

    if over:
        # Shards that run past the last tile re-read the final tile (clamped,
        # always in-bounds) and are fully masked out inside the kernel.
        in_map = lambda s, i: (jnp.minimum(s * tiles_per_shard + i, tiles_total - 1), 0)
    else:
        in_map = lambda s, i: (s * tiles_per_shard + i, 0)

    kernel = functools.partial(
        _charbonnier_kernel, eps=eps, rows=rows, lanes=lanes, tile_r=tile_r,
        tiles_per_shard=tiles_per_shard, needs_mask=needs_mask)

    block_bytes = tile_r * lanes * dtype_bytes
    # 2 inputs x 2 pipeline buffers x block + (8, lanes) accumulator + slack.
    vmem_limit = int(min(max(4 * block_bytes + 8 * lanes * 4 + (2 << 20), 16 << 20),
                         40 << 20))
    streamed = num_shards * tiles_per_shard * tile_r * lanes

    out = pl.pallas_call(
        kernel,
        out_shape=jax.ShapeDtypeStruct((num_shards, 1), jnp.float32),
        grid_spec=pltpu.PrefetchScalarGridSpec(
            num_scalar_prefetch=0,
            grid=(num_shards, tiles_per_shard),
            in_specs=[
                pl.BlockSpec((tile_r, lanes), in_map),
                pl.BlockSpec((tile_r, lanes), in_map),
            ],
            out_specs=pl.BlockSpec(
                (1, 1), lambda s, i: (s, 0),
                memory_space=pltpu.MemorySpace.SMEM,
            ),
            scratch_shapes=[pltpu.VMEM((8, lanes), jnp.float32)],
        ),
        compiler_params=pltpu.CompilerParams(
            # TODO(synk): if a v7x profile shows only one TC active, switch the
            # shard axis to pltpu.CORE_PARALLEL / pl.core_map over a TC mesh.
            dimension_semantics=("parallel", "arbitrary"),
            vmem_limit_bytes=vmem_limit,
        ),
        cost_estimate=pl.CostEstimate(
            flops=4 * streamed,
            transcendentals=streamed,
            bytes_accessed=2 * streamed * dtype_bytes + 4 * num_shards,
        ),
    )(x2, y2)

    loss = jnp.sum(out)
    if x_tail is not None and x_tail.size:
        loss = loss + _plain(x_tail, y_tail)
    return loss


def _reference(x, y, eps):
    diff = x.astype(jnp.float32) - y.astype(jnp.float32)
    return jnp.sum(jnp.sqrt(diff * diff + eps))


if __name__ == "__main__":
    key = jax.random.PRNGKey(0)
    kx, ky = jax.random.split(key)
    eps = 1e-3

    cases = [
        # NCHW image batch (module's typical use): single-block, masked tail.
        ((2, 4, 16, 16), {}),
        # Ragged shape: exercises the plain-JAX remainder path.
        ((1, 3, 13, 17), {}),
        # Multi-tile grid + 2 shards: exercises boundary mask and clamped blocks.
        ((2, 3, 40, 256), dict(target_block_bytes=80 << 10, num_shards=2)),
        # Exactly-dividing case: exercises the statically unmasked fast path.
        ((2, 8, 16, 128), {}),
    ]

    ok = True
    for shape, kw in cases:
        x = jax.random.normal(kx, shape, dtype=jnp.float32)
        y = jax.random.normal(ky, shape, dtype=jnp.float32)
        got = jax.block_until_ready(charbonnier_loss(x, y, eps=eps, **kw))
        want = _reference(x, y, eps)
        ok = ok and bool(jnp.allclose(got, want, rtol=2e-4, atol=1e-2))

    print("KERNEL_OK" if ok else "MISMATCH")
</pallas_src>

<mosaic_0001>
module attributes {stable_mosaic.version = 11 : i64} {
  func.func @_charbonnier_kernel(%arg0: i32, %arg1: i32, %arg2: memref<8x2048xf32, #tpu.memory_space<vmem>>, %arg3: memref<8x2048xf32, #tpu.memory_space<vmem>>, %arg4: memref<1x1xf32, #tpu.memory_space<smem>>, %arg5: memref<8x2048xf32, #tpu.memory_space<vmem>>) attributes {dimension_semantics = [#tpu.dimension_semantics<parallel>, #tpu.dimension_semantics<arbitrary>], iteration_bounds = array<i64: 1, 1>, scalar_prefetch = 0 : i64, scratch_operands = 1 : i64, tpu.core_type = #tpu.core_type<tc>, window_params = [{transform_indices = @transform_0, window_bounds = array<i64: 8, 2048>}, {transform_indices = @transform_1, window_bounds = array<i64: 8, 2048>}, {transform_indices = @transform_2, window_bounds = array<i64: 1, 1>}]} {
    %c0_i32 = arith.constant 0 : i32
    %0 = arith.cmpi eq, %arg1, %c0_i32 : i32
    %1 = arith.extui %0 : i1 to i32
    %c0_i32_0 = arith.constant 0 : i32
    %2 = arith.cmpi ne, %1, %c0_i32_0 : i32
    scf.if %2 {
      %cst_12 = arith.constant 0.000000e+00 : f32
      %24 = vector.broadcast %cst_12 : f32 to vector<8x2048xf32>
      %c0_13 = arith.constant 0 : index
      %c0_14 = arith.constant 0 : index
      %25 = vector.load %arg5[%c0_13, %c0_14] : memref<8x2048xf32, #tpu.memory_space<vmem>>, vector<8x2048xf32>
      tpu.vector_store %arg5[%c0_13, %c0_14], %24 {strides = array<i32>} : memref<8x2048xf32, #tpu.memory_space<vmem>>, vector<8x2048xf32>,
    } else {
    }
    %c0 = arith.constant 0 : index
    %c0_1 = arith.constant 0 : index
    %3 = vector.load %arg2[%c0, %c0_1] : memref<8x2048xf32, #tpu.memory_space<vmem>>, vector<8x2048xf32>
    %c0_2 = arith.constant 0 : index
    %c0_3 = arith.constant 0 : index
    %4 = vector.load %arg3[%c0_2, %c0_3] : memref<8x2048xf32, #tpu.memory_space<vmem>>, vector<8x2048xf32>
    %5 = arith.subf %3, %4 : vector<8x2048xf32>
    %6 = arith.mulf %5, %5 : vector<8x2048xf32>
    %cst = arith.constant 1.000000e-03 : f32
    %7 = vector.broadcast %cst : f32 to vector<8x2048xf32>
    %8 = arith.addf %6, %7 : vector<8x2048xf32>
    %9 = math.sqrt %8 : vector<8x2048xf32>
    %c1_i32 = arith.constant 1 : i32
    %10 = arith.muli %arg0, %c1_i32 : i32
    %11 = arith.addi %10, %arg1 : i32
    %c8_i32 = arith.constant 8 : i32
    %12 = arith.muli %11, %c8_i32 : i32
    %c8_i32_4 = arith.constant 8 : i32
    %13 = arith.addi %12, %c8_i32_4 : i32
    %c1_i32_5 = arith.constant 1 : i32
    %14 = arith.cmpi sle, %13, %c1_i32_5 : i32
    %15 = arith.extui %14 : i1 to i32
    %c0_i32_6 = arith.constant 0 : i32
    %16 = arith.cmpi ne, %15, %c0_i32_6 : i32
    scf.if %16 {
      %c0_12 = arith.constant 0 : index
      %c0_13 = arith.constant 0 : index
      %24 = vector.load %arg5[%c0_12, %c0_13] : memref<8x2048xf32, #tpu.memory_space<vmem>>, vector<8x2048xf32>
      %25 = vector.shape_cast %9 : vector<8x2048xf32> to vector<1x8x2048xf32>
      %cst_14 = arith.constant dense<0.000000e+00> : vector<8x2048xf32>
      %26 = vector.multi_reduction <add>, %25, %cst_14 [0] : vector<1x8x2048xf32> to vector<8x2048xf32>
      %27 = arith.addf %24, %26 : vector<8x2048xf32>
      %c0_15 = arith.constant 0 : index
      %c0_16 = arith.constant 0 : index
      %28 = vector.load %arg5[%c0_15, %c0_16] : memref<8x2048xf32, #tpu.memory_space<vmem>>, vector<8x2048xf32>
      tpu.vector_store %arg5[%c0_15, %c0_16], %27 {strides = array<i32>} : memref<8x2048xf32, #tpu.memory_space<vmem>>, vector<8x2048xf32>,
    } else {
    }
    %c8_i32_7 = arith.constant 8 : i32
    %17 = arith.addi %12, %c8_i32_7 : i32
    %c1_i32_8 = arith.constant 1 : i32
    %18 = arith.cmpi sgt, %17, %c1_i32_8 : i32
    %19 = arith.extui %18 : i1 to i32
    %c0_i32_9 = arith.constant 0 : i32
    %20 = arith.cmpi ne, %19, %c0_i32_9 : i32
    scf.if %20 {
      %c1_i32_12 = arith.constant 1 : i32
      %24 = arith.subi %c1_i32_12, %12 : i32
      %25 = tpu.iota {dimensions = array<i32: 0>} : vector<8x2048xi32>
      %26 = vector.broadcast %24 : i32 to vector<8x2048xi32>
      %27 = arith.cmpi slt, %25, %26 : vector<8x2048xi32>
      %cst_13 = arith.constant 0.000000e+00 : f32
      %28 = vector.broadcast %cst_13 : f32 to vector<8x2048xf32>
      %29 = arith.select %27, %9, %28 : vector<8x2048xi1>, vector<8x2048xf32>
      %c0_14 = arith.constant 0 : index
      %c0_15 = arith.constant 0 : index
      %30 = vector.load %arg5[%c0_14, %c0_15] : memref<8x2048xf32, #tpu.memory_space<vmem>>, vector<8x2048xf32>
      %31 = vector.shape_cast %29 : vector<8x2048xf32> to vector<1x8x2048xf32>
      %cst_16 = arith.constant dense<0.000000e+00> : vector<8x2048xf32>
      %32 = vector.multi_reduction <add>, %31, %cst_16 [0] : vector<1x8x2048xf32> to vector<8x2048xf32>
      %33 = arith.addf %30, %32 : vector<8x2048xf32>
      %c0_17 = arith.constant 0 : index
      %c0_18 = arith.constant 0 : index
      %34 = vector.load %arg5[%c0_17, %c0_18] : memref<8x2048xf32, #tpu.memory_space<vmem>>, vector<8x2048xf32>
      tpu.vector_store %arg5[%c0_17, %c0_18], %33 {strides = array<i32>} : memref<8x2048xf32, #tpu.memory_space<vmem>>, vector<8x2048xf32>,
    } else {
    }
    %c0_i32_10 = arith.constant 0 : i32
    %21 = arith.cmpi eq, %arg1, %c0_i32_10 : i32
    %22 = arith.extui %21 : i1 to i32
    %c0_i32_11 = arith.constant 0 : i32
    %23 = arith.cmpi ne, %22, %c0_i32_11 : i32
    scf.if %23 {
      %c0_12 = arith.constant 0 : index
      %c0_13 = arith.constant 0 : index
      %24 = vector.load %arg5[%c0_12, %c0_13] : memref<8x2048xf32, #tpu.memory_space<vmem>>, vector<8x2048xf32>
      %25 = vector.shape_cast %24 : vector<8x2048xf32> to vector<1x8x2048xf32>
      %cst_14 = arith.constant dense<0.000000e+00> : vector<1xf32>
      %26 = vector.multi_reduction <add>, %25, %cst_14 [1, 2] : vector<1x8x2048xf32> to vector<1xf32>
      %27 = vector.shape_cast %26 : vector<1xf32> to vector<1x1x1xf32>
      %28 = vector.extract %27[0, 0, 0] : f32 from vector<1x1x1xf32>
      %c0_15 = arith.constant 0 : index
      %c0_16 = arith.constant 0 : index
      %29 = memref.load %arg4[%c0_15, %c0_16] : memref<1x1xf32, #tpu.memory_space<smem>>
      memref.store %28, %arg4[%c0_15, %c0_16] : memref<1x1xf32, #tpu.memory_space<smem>>
    } else {
    }
    return
  }
  func.func @transform_0(%arg0: i32, %arg1: i32) -> (i32, i32) {
    %c1_i32 = arith.constant 1 : i32
    %0 = arith.muli %arg0, %c1_i32 : i32
    %1 = arith.addi %0, %arg1 : i32
    %c0_i32 = arith.constant 0 : i32
    %c0_i32_0 = arith.constant 0 : i32
    return %1, %c0_i32 : i32, i32
  }
  func.func @transform_1(%arg0: i32, %arg1: i32) -> (i32, i32) {
    %c1_i32 = arith.constant 1 : i32
    %0 = arith.muli %arg0, %c1_i32 : i32
    %1 = arith.addi %0, %arg1 : i32
    %c0_i32 = arith.constant 0 : i32
    %c0_i32_0 = arith.constant 0 : i32
    return %1, %c0_i32 : i32, i32
  }
  func.func @transform_2(%arg0: i32, %arg1: i32) -> (i32, i32) {
    %c0_i32 = arith.constant 0 : i32
    %c0_i32_0 = arith.constant 0 : i32
    return %arg0, %c0_i32 : i32, i32
  }
}

</mosaic_0001>

<bundles_post_ra>
// kernel: tpu_custom_call.1
= control target key start
LH: loop header
LB: loop body
LE: loop exit
PB: predicated region body
PF: predicated region fallthrough
CT: control target
= control target key end

     0   :  { %7 = vsyncpa [#allocation4], 0  ;;  %s806_s0 = inlined_call_operand.hbm [shape: f32[8,2048], index: 0, kind: input, shape index: {}]   ;;  %s807_s1 = inlined_call_operand.hbm [shape: f32[8,2048], index: 1, kind: input, shape index: {}]   ;;  %s808_s2 = inlined_call_operand.hbm [shape: f32[1,1], index: 2, kind: output, shape index: {}]  }
   0x1   :  { %8 = vsyncpa [#allocation7], 0 }
   0x2   :  { %9 = vsyncpa [#allocation5], 0  ;;  %s575_s9 = smov [#allocation3]   ;;  %s576_s11 = smov [#allocation6]  }
   0x3   :  { %s20_s10 = sshll.u32 %s575_s9, 4  ;;  %s34_s12 = sshll.u32 %s576_s11, 4  ;;  %s21_s10 = int_to_ptr.vmem [resolvable:$true] %s20_s10  ;;  %s35_s12 = int_to_ptr.vmem [resolvable:$true] %s34_s12 }
   0x4   :  { %s515_s15 = scalar_lea.hbm %s806_s0, 2048 }
   0x5   :  { %p516_p0 = scmp.ne.s32.totalorder %s806_s0, %s515_s15  ;;  %p519_p1 = scmp.lt.u32.totalorder %s515_s15, %s806_s0 }
   0x7   :  { %p521_p2 = pnand %p519_p1, %p516_p0 }
   0x9   :  { %524 = shalt.err (!%p521_p2)
}
   0xa   :  { %s525_s20 = scalar_lea.vmem %s21_s10, 2048  ;;  %p530_p4 = scmp.lt.s32.totalorder %s21_s10, %s21_s10 }
   0xb   :  { %p526_p3 = scmp.ne.s32.totalorder %s21_s10, %s525_s20  ;;  %p531_p5 = scmp.lt.s32.totalorder %s525_s20, %s525_s20 }
   0xd   :  { %p532_p6 = por %p531_p5, %p530_p4 }
   0xf   :  { %p533_p7 = pnand %p532_p6, %p526_p3 }
  0x11   :  { %536 = shalt.err (!%p533_p7)
}
  0x12   :  { %23 = dma.hbm_to_vmem [thread:$0]  %s806_s0, 2048, %s21_s10, [#allocation4]  }
  0x13   :  { %s537_s25 = scalar_lea.hbm %s807_s1, 2048 }
  0x14   :  { %p538_p8 = scmp.ne.s32.totalorder %s807_s1, %s537_s25  ;;  %p541_p9 = scmp.lt.u32.totalorder %s537_s25, %s807_s1 }
  0x16   :  { %p543_p10 = pnand %p541_p9, %p538_p8 }
  0x18   :  { %546 = shalt.err (!%p543_p10)
}
  0x19   :  { %s547_s30 = scalar_lea.vmem %s35_s12, 2048  ;;  %p552_p12 = scmp.lt.s32.totalorder %s35_s12, %s35_s12 }
  0x1a   :  { %p548_p11 = scmp.ne.s32.totalorder %s35_s12, %s547_s30  ;;  %p553_p13 = scmp.lt.s32.totalorder %s547_s30, %s547_s30 }
  0x1c   :  { %p554_p0 = por %p553_p13, %p552_p12 }
  0x1e   :  { %p555_p1 = pnand %p554_p0, %p548_p11 }
  0x20   :  { %558 = shalt.err (!%p555_p1)
}
  0x21   :  { %37 = dma.hbm_to_vmem [thread:$0]  %s807_s1, 2048, %s35_s12, [#allocation7]  }
  0x22   :  { %569 = dma.done.wait [#allocation4], 2048  }
  0x23   :  { %570 = vsyncadd [#allocation4], 4294965248 }
  0x24   :  { %571 = dma.done.wait [#allocation7], 2048  }
  0x25   :  { %572 = vsyncadd [#allocation7], 4294965248  ;;  %v66_v0 = vld [vmem:[#allocation3] sm:$0xff]  ;;  %v67_v2 = vld [vmem:[#allocation3 + $0x8] sm:$0xff]  ;;  %v334_v53 = vlaneseq  ;;  %s559_s6 = scalar_lea.hbm %s808_s2, 16 }
  0x26   :  { %v82_v1 = vld [vmem:[#allocation6] sm:$0xff]  ;;  %v83_v3 = vld [vmem:[#allocation6 + $0x8] sm:$0xff]  ;;  %v68_v4 = vld [vmem:[#allocation3 + $0x10] sm:$0xff]  ;;  %p560_p2 = scmp.ne.s32.totalorder %s808_s2, %s559_s6  ;;  %p563_p3 = scmp.lt.u32.totalorder %s559_s6, %s808_s2 }
  0x27   :  { %v84_v5 = vld [vmem:[#allocation6 + $0x10] sm:$0xff]  ;;  %v98_v6 = vsub.f32 %v66_v0, %v82_v1  ;;  %v99_v7 = vsub.f32 %v67_v2, %v83_v3  ;;  %v69_v8 = vld [vmem:[#allocation3 + $0x18] sm:$0xff]  ;;  %v70_v11 = vld [vmem:[#allocation3 + $0x20] sm:$0xff]  ;;  %v636_v2 = vshrl.u32 %v334_v53, 7 }
  0x28   :  { %v85_v9 = vld [vmem:[#allocation6 + $0x18] sm:$0xff]  ;;  %v100_v10 = vsub.f32 %v68_v4, %v84_v5  ;;  %v86_v12 = vld [vmem:[#allocation6 + $0x20] sm:$0xff]  ;;  %v71_v16 = vld [vmem:[#allocation3 + $0x28] sm:$0xff]  ;;  %p565_p4 = pnand %p563_p3, %p560_p2 }
  0x29   :  { %v114_v13 = vmul.f32 %v98_v6, %v98_v6  ;;  %v101_v14 = vsub.f32 %v69_v8, %v85_v9  ;;  %v115_v15 = vmul.f32 %v99_v7, %v99_v7  ;;  %v87_v17 = vld [vmem:[#allocation6 + $0x28] sm:$0xff]  ;;  %v102_v18 = vsub.f32 %v70_v11, %v86_v12  ;;  %v72_v20 = vld [vmem:[#allocation3 + $0x30] sm:$0xff]  ;;  %v73_v26 = vld [vmem:[#allocation3 + $0x38] sm:$0xff] }
  0x2a   :  { %v116_v19 = vmul.f32 %v100_v10, %v100_v10  ;;  %v88_v21 = vld [vmem:[#allocation6 + $0x30] sm:$0xff]  ;;  %v103_v23 = vsub.f32 %v71_v16, %v87_v17  ;;  %v89_v27 = vld [vmem:[#allocation6 + $0x38] sm:$0xff]  ;;  %v74_v31 = vld [vmem:[#allocation3 + $0x40] sm:$0xff]  ;;  %vm337_vm0 = vcmp.lt.s32.totalorder %v636_v2, 1 }
  0x2b   :  { %v617_v22 = vadd.f32 0.001, %v114_v13  ;;  %v117_v24 = vmul.f32 %v101_v14, %v101_v14  ;;  %v619_v25 = vadd.f32 0.001, %v115_v15  ;;  %v104_v28 = vsub.f32 %v72_v20, %v88_v21  ;;  %v75_v32 = vld [vmem:[#allocation3 + $0x48] sm:$0xff]  ;;  %v90_v33 = vld [vmem:[#allocation6 + $0x40] sm:$0xff] }
  0x2c   :  { %v118_v29 = vmul.f32 %v102_v18, %v102_v18  ;;  %v621_v30 = vadd.f32 0.001, %v116_v19  ;;  %v76_v34 = vld [vmem:[#allocation3 + $0x50] sm:$0xff]  ;;  %v91_v35 = vld [vmem:[#allocation6 + $0x48] sm:$0xff]  ;;  %v105_v37 = vsub.f32 %v73_v26, %v89_v27  ;;  %v119_v38 = vmul.f32 %v103_v23, %v103_v23  ;;  %v77_v40 = vld [vmem:[#allocation3 + $0x58] sm:$0xff] }
  0x2d   :  { %483 = vrsqrt.f32 %v617_v22  ;;  %v92_v36 = vld [vmem:[#allocation6 + $0x50] sm:$0xff]  ;;  %v624_v39 = vadd.f32 0.001, %v117_v24  ;;  %v78_v41 = vld [vmem:[#allocation3 + $0x60] sm:$0xff]  ;;  %v93_v42 = vld [vmem:[#allocation6 + $0x58] sm:$0xff]  ;;  %v106_v46 = vsub.f32 %v74_v31, %v90_v33  ;;  %v120_v47 = vmul.f32 %v104_v28, %v104_v28 }
  0x2e   :  { %485 = vrsqrt.f32 %v619_v25  ;;  %v79_v43 = vld [vmem:[#allocation3 + $0x68] sm:$0xff]  ;;  %v94_v44 = vld [vmem:[#allocation6 + $0x60] sm:$0xff]  ;;  %v627_v48 = vadd.f32 0.001, %v118_v29  ;;  %v80_v49 = vld [vmem:[#allocation3 + $0x70] sm:$0xff]  ;;  %v107_v51 = vsub.f32 %v75_v32, %v91_v35  ;;  %v108_v52 = vsub.f32 %v76_v34, %v92_v36 }
  0x2f   :  { %v95_v45 = vld [vmem:[#allocation6 + $0x68] sm:$0xff]  ;;  %487 = vrsqrt.f32 %v621_v30  ;;  %v96_v50 = vld [vmem:[#allocation6 + $0x70] sm:$0xff]  ;;  %v81_v54 = vld [vmem:[#allocation3 + $0x78] sm:$0xff]  ;;  %v109_v56 = vsub.f32 %v77_v40, %v93_v42  ;;  %v121_v57 = vmul.f32 %v105_v37, %v105_v37  ;;  %v630_v58 = vadd.f32 0.001, %v119_v38 }
  0x30   :  { %v97_v55 = vld [vmem:[#allocation6 + $0x78] sm:$0xff]  ;;  %489 = vrsqrt.f32 %v624_v39  ;;  %v110_v59 = vsub.f32 %v78_v41, %v94_v44  ;;  %v111_v60 = vsub.f32 %v79_v43, %v95_v45  ;;  %v112_v61 = vsub.f32 %v80_v49, %v96_v50 }
  0x31   :  { %v122_v62 = vmul.f32 %v106_v46, %v106_v46  ;;  %v633_v63 = vadd.f32 0.001, %v120_v47  ;;  %491 = vrsqrt.f32 %v627_v48  ;;  %v113_v0 = vsub.f32 %v81_v54, %v97_v55 }
  0x32   :  { %v123_v1 = vmul.f32 %v107_v51, %v107_v51  ;;  %v124_v3 = vmul.f32 %v108_v52, %v108_v52  ;;  %v125_v4 = vmul.f32 %v109_v56, %v109_v56  ;;  %v638_v5 = vadd.f32 0.001, %v121_v57 }
  0x33   :  { %493 = vrsqrt.f32 %v630_v58  ;;  %v126_v7 = vmul.f32 %v110_v59, %v110_v59  ;;  %v127_v8 = vmul.f32 %v111_v60, %v111_v60  ;;  %v128_v10 = vmul.f32 %v112_v61, %v112_v61 }
  0x34   :  { %v641_v11 = vadd.f32 0.001, %v122_v62  ;;  %495 = vrsqrt.f32 %v633_v63  ;;  %v129_v12 = vmul.f32 %v113_v0, %v113_v0  ;;  %v644_v14 = vadd.f32 0.001, %v123_v1 }
  0x35   :  { %v646_v15 = vadd.f32 0.001, %v124_v3  ;;  %v648_v16 = vadd.f32 0.001, %v125_v4  ;;  %497 = vrsqrt.f32 %v638_v5  ;;  %v652_v17 = vadd.f32 0.001, %v126_v7 }
  0x36   :  { %v654_v18 = vadd.f32 0.001, %v127_v8  ;;  %v658_v23 = vadd.f32 0.001, %v128_v10  ;;  %vm148_vm1 = vcmp.eq.f32.partialorder %v617_v22, inf  ;;  %vm155_vm2 = vcmp.eq.f32.partialorder %v619_v25, inf }
  0x37   :  { %v484_v6 = vpop.eup %483  ;;  %499 = vrsqrt.f32 %v641_v11  ;;  %v663_v24 = vadd.f32 0.001, %v129_v12  ;;  %vm150_vm3 = vcmp.eq.f32.partialorder %v617_v22, 0.0  ;;  %v151_v26 = vand.u32 2147483648, %v617_v22 }
  0x38   :  { %v486_v9 = vpop.eup %485  ;;  %v147_v19 = vmul.f32 %v484_v6, %v617_v22  ;;  %vm157_vm4 = vcmp.eq.f32.partialorder %v619_v25, 0.0  ;;  %v158_v29 = vand.u32 2147483648, %v619_v25  ;;  %vm162_vm5 = vcmp.eq.f32.partialorder %v621_v30, inf }
  0x39   :  { %v488_v13 = vpop.eup %487  ;;  %v154_v20 = vmul.f32 %v486_v9, %v619_v25  ;;  %501 = vrsqrt.f32 %v644_v14  ;;  %vm164_vm6 = vcmp.eq.f32.partialorder %v621_v30, 0.0  ;;  %v165_v35 = vand.u32 2147483648, %v621_v30 }
  0x3a   :  { %v490_v21 = vpop.eup %489  ;;  %v161_v27 = vmul.f32 %v488_v13, %v621_v30  ;;  %v149_v31 = vsel %vm148_vm1, %v617_v22, %v147_v19  ;;  %vm169_vm7 = vcmp.eq.f32.partialorder %v624_v39, inf  ;;  %vm171_vm8 = vcmp.eq.f32.partialorder %v624_v39, 0.0 }
  0x3b   :  { %v492_v28 = vpop.eup %491  ;;  %v156_v32 = vsel %vm155_vm2, %v619_v25, %v154_v20  ;;  %v168_v33 = vmul.f32 %v490_v21, %v624_v39  ;;  %503 = vrsqrt.f32 %v646_v15  ;;  %v172_v37 = vand.u32 2147483648, %v624_v39 }
  0x3c   :  { %v163_v36 = vsel %vm162_vm5, %v621_v30, %v161_v27  ;;  %v175_v38 = vmul.f32 %v492_v28, %v627_v48  ;;  %vm176_vm9 = vcmp.eq.f32.partialorder %v627_v48, inf  ;;  %v152_v41 = vsel %vm150_vm3, %v151_v26, %v149_v31 }
  0x3d   :  { %v494_v34 = vpop.eup %493  ;;  %v159_v42 = vsel %vm157_vm4, %v158_v29, %v156_v32  ;;  %vm178_vm10 = vcmp.eq.f32.partialorder %v627_v48, 0.0  ;;  %505 = vrsqrt.f32 %v648_v16  ;;  %v170_v43 = vsel %vm169_vm7, %v624_v39, %v168_v33 }
  0x3e   :  { %v496_v40 = vpop.eup %495  ;;  %v179_v44 = vand.u32 2147483648, %v627_v48  ;;  %v182_v45 = vmul.f32 %v494_v34, %v630_v58  ;;  %vm183_vm11 = vcmp.eq.f32.partialorder %v630_v58, inf  ;;  %v166_v22 = vsel %vm164_vm6, %v165_v35, %v163_v36 }
  0x3f   :  { %v498_v46 = vpop.eup %497  ;;  %vm185_vm12 = vcmp.eq.f32.partialorder %v630_v58, 0.0  ;;  %v186_v25 = vand.u32 2147483648, %v630_v58  ;;  %507 = vrsqrt.f32 %v652_v17  ;;  %v177_v47 = vsel %vm176_vm9, %v627_v48, %v175_v38 }
  0x40   :  { %v189_v49 = vmul.f32 %v496_v40, %v633_v63  ;;  %v338_v50 = vsel %vm337_vm0, %v152_v41, 0.0  ;;  %v339_v51 = vsel %vm337_vm0, %v159_v42, 0.0  ;;  %v173_v30 = vsel %vm171_vm8, %v172_v37, %v170_v43 }
  0x41   :  { %v500_v52 = vpop.eup %499  ;;  %vm190_vm13 = vcmp.eq.f32.partialorder %v633_v63, inf  ;;  %vm192_vm14 = vcmp.eq.f32.partialorder %v633_v63, 0.0  ;;  %509 = vrsqrt.f32 %v654_v18  ;;  %v184_v53 = vsel %vm183_vm11, %v630_v58, %v182_v45 }
  0x42   :  { %v193_v54 = vand.u32 2147483648, %v633_v63  ;;  %v196_v55 = vmul.f32 %v498_v46, %v638_v5  ;;  %v340_v56 = vsel %vm337_vm0, %v166_v22, 0.0  ;;  %v180_v39 = vsel %vm178_vm10, %v179_v44, %v177_v47 }
  0x43   :  { %v502_v57 = vpop.eup %501  ;;  %vm197_vm15 = vcmp.eq.f32.partialorder %v638_v5, inf  ;;  %511 = vrsqrt.f32 %v658_v23  ;;  %v437_v59 = vadd.f32 %v339_v51, %v338_v50  ;;  %v191_v60 = vsel %vm190_vm13, %v633_v63, %v189_v49 }
  0x44   :  { %v200_v61 = vand.u32 2147483648, %v638_v5  ;;  %v203_v62 = vmul.f32 %v500_v52, %v641_v11  ;;  %v341_v0 = vsel %vm337_vm0, %v173_v30, 0.0  ;;  %v187_v3 = vsel %vm185_vm12, %v186_v25, %v184_v53 }
  0x45   :  { %v504_v1 = vpop.eup %503  ;;  %vm204_vm1 = vcmp.eq.f32.partialorder %v641_v11, inf  ;;  %513 = vrsqrt.f32 %v663_v24  ;;  %v438_v48 = vadd.f32 %v437_v59, %v340_v56  ;;  %v198_v4 = vsel %vm197_vm15, %v638_v5, %v196_v55 }
  0x46   :  { %vm199_vm2 = vcmp.eq.f32.partialorder %v638_v5, 0.0  ;;  %v210_v6 = vmul.f32 %v502_v57, %v644_v14  ;;  %v342_v7 = vsel %vm337_vm0, %v180_v39, 0.0  ;;  %v194_v9 = vsel %vm192_vm14, %v193_v54, %v191_v60 }
  0x47   :  { %v506_v8 = vpop.eup %505  ;;  %v207_v58 = vand.u32 2147483648, %v641_v11  ;;  %vm211_vm3 = vcmp.eq.f32.partialorder %v644_v14, inf  ;;  %v439_v10 = vadd.f32 %v438_v48, %v341_v0  ;;  %v205_v12 = vsel %vm204_vm1, %v641_v11, %v203_v62 }
  0x48   :  { %vm206_vm4 = vcmp.eq.f32.partialorder %v641_v11, 0.0  ;;  %v217_v5 = vmul.f32 %v504_v1, %v646_v15  ;;  %v343_v13 = vsel %vm337_vm0, %v187_v3, 0.0  ;;  %v201_v20 = vsel %vm199_vm2, %v200_v61, %v198_v4 }
  0x49   :  { %v508_v19 = vpop.eup %507  ;;  %v214_v21 = vand.u32 2147483648, %v644_v14  ;;  %vm218_vm5 = vcmp.eq.f32.partialorder %v646_v15, inf  ;;  %v440_v63 = vadd.f32 %v439_v10, %v342_v7  ;;  %v212_v26 = vsel %vm211_vm3, %v644_v14, %v210_v6 }
  0x4a   :  { %vm213_vm6 = vcmp.eq.f32.partialorder %v644_v14, 0.0  ;;  %v224_v27 = vmul.f32 %v506_v8, %v648_v16  ;;  %v344_v11 = vsel %vm337_vm0, %v194_v9, 0.0  ;;  %v208_v29 = vsel %vm206_vm4, %v207_v58, %v205_v12 }
  0x4b   :  { %v510_v28 = vpop.eup %509  ;;  %v221_v31 = vand.u32 2147483648, %v646_v15  ;;  %vm225_vm7 = vcmp.eq.f32.partialorder %v648_v16, inf  ;;  %v441_v32 = vadd.f32 %v440_v63, %v343_v13  ;;  %v219_v33 = vsel %vm218_vm5, %v646_v15, %v217_v5 }
  0x4c   :  { %vm220_vm8 = vcmp.eq.f32.partialorder %v646_v15, 0.0  ;;  %v231_v34 = vmul.f32 %v508_v19, %v652_v17  ;;  %v345_v14 = vsel %vm337_vm0, %v201_v20, 0.0  ;;  %v215_v36 = vsel %vm213_vm6, %v214_v21, %v212_v26 }
  0x4d   :  { %v512_v35 = vpop.eup %511  ;;  %v228_v37 = vand.u32 2147483648, %v648_v16  ;;  %vm232_vm9 = vcmp.eq.f32.partialorder %v652_v17, inf  ;;  %v442_v38 = vadd.f32 %v441_v32, %v344_v11  ;;  %v226_v40 = vsel %vm225_vm7, %v648_v16, %v224_v27 }
  0x4e   :  { %vm227_vm10 = vcmp.eq.f32.partialorder %v648_v16, 0.0  ;;  %v238_v41 = vmul.f32 %v510_v28, %v654_v18  ;;  %v346_v15 = vsel %vm337_vm0, %v208_v29, 0.0  ;;  %v222_v43 = vsel %vm220_vm8, %v221_v31, %v219_v33 }
  0x4f   :  { %v514_v42 = vpop.eup %513  ;;  %v235_v44 = vand.u32 2147483648, %v652_v17  ;;  %vm239_vm11 = vcmp.eq.f32.partialorder %v654_v18, inf  ;;  %v443_v45 = vadd.f32 %v442_v38, %v345_v14  ;;  %v233_v46 = vsel %vm232_vm9, %v652_v17, %v231_v34 }
  0x50   :  { %vm234_vm12 = vcmp.eq.f32.partialorder %v652_v17, 0.0  ;;  %v245_v22 = vmul.f32 %v512_v35, %v658_v23  ;;  %v347_v16 = vsel %vm337_vm0, %v215_v36, 0.0  ;;  %v229_v25 = vsel %vm227_vm10, %v228_v37, %v226_v40 }
  0x51   :  { %v242_v47 = vand.u32 2147483648, %v654_v18  ;;  %vm246_vm13 = vcmp.eq.f32.partialorder %v658_v23, inf  ;;  %v444_v49 = vadd.f32 %v443_v45, %v346_v15  ;;  %v240_v50 = vsel %vm239_vm11, %v654_v18, %v238_v41 }
  0x52   :  { %vm241_vm14 = vcmp.eq.f32.partialorder %v654_v18, 0.0  ;;  %v252_v51 = vmul.f32 %v514_v42, %v663_v24  ;;  %v348_v17 = vsel %vm337_vm0, %v222_v43, 0.0  ;;  %v236_v52 = vsel %vm234_vm12, %v235_v44, %v233_v46 }
  0x53   :  { %v249_v30 = vand.u32 2147483648, %v658_v23  ;;  %vm253_vm15 = vcmp.eq.f32.partialorder %v663_v24, inf  ;;  %v445_v53 = vadd.f32 %v444_v49, %v347_v16  ;;  %v247_v54 = vsel %vm246_vm13, %v658_v23, %v245_v22 }
  0x54   :  { %vm248_vm1 = vcmp.eq.f32.partialorder %v658_v23, 0.0  ;;  %v349_v55 = vsel %vm337_vm0, %v229_v25, 0.0  ;;  %v243_v56 = vsel %vm241_vm14, %v242_v47, %v240_v50  ;;  %v256_v18 = vand.u32 2147483648, %v663_v24 }
  0x55   :  { %v446_v57 = vadd.f32 %v445_v53, %v348_v17  ;;  %v254_v39 = vsel %vm253_vm15, %v663_v24, %v252_v51  ;;  %vm255_vm2 = vcmp.eq.f32.partialorder %v663_v24, 0.0  ;;  %v350_v59 = vsel %vm337_vm0, %v236_v52, 0.0 }
  0x56   :  { %v250_v60 = vsel %vm248_vm1, %v249_v30, %v247_v54  ;;  %v351_v62 = vsel %vm337_vm0, %v243_v56, 0.0  ;;  %v257_v23 = vsel %vm255_vm2, %v256_v18, %v254_v39 }
  0x57   :  { %v447_v61 = vadd.f32 %v446_v57, %v349_v55  ;;  %v352_v1 = vsel %vm337_vm0, %v250_v60, 0.0  ;;  %v353_v48 = vsel %vm337_vm0, %v257_v23, 0.0 }
  0x59   :  { %v448_v0 = vadd.f32 %v447_v61, %v350_v59 }
  0x5b   :  { %v449_v3 = vadd.f32 %v448_v0, %v351_v62 }
  0x5d   :  { %v450_v4 = vadd.f32 %v449_v3, %v352_v1 }
  0x5f   :  { %v451_v6 = vadd.f32 %v450_v4, %v353_v48 }
  0x61   :  { %452 = vadd.xlane.f32.xlu0 %v451_v6 }
  0xee   :  { %v453_v24 = vpop.xlane.xlu0 %452 }
  0xef   :  { %v454_v7 = vrot.slane %v453_v24, 4 }
  0xf1   :  { %v455_v8 = vadd.f32 %v454_v7, %v453_v24 }
  0xf3   :  { %v456_v9 = vrot.slane %v455_v8, 2 }
  0xf5   :  { %v457_v58 = vadd.f32 %v456_v9, %v455_v8 }
  0xf7   :  { %v458_v10 = vrot.slane %v457_v58, 1 }
  0xf9   :  { %v459_v12 = vadd.f32 %v458_v10, %v457_v58 }
  0xfb   :  { %478 = vpush %v459_v12 }
 0x12c   :  { %s479_s1 = spop %478 }
 0x12d   :  { %462 = sst [smem:[#allocation8]] %s479_s1 }
 0x12e   :  { %568 = shalt.err (!%p565_p4)
}
 0x12f   :  { %s577_s11 = smov [#allocation8]  }
 0x130   :  { %470 = dma.smem_to_hbm %s577_s11, 16, %s808_s2, [#allocation5]  }
 0x131   :  { %573 = dma.done.wait [#allocation5], 16  }
 0x132   :  { %574 = vsyncadd [#allocation5], 4294967280 }
 0x133   :  { %474 = sfence }
 0x134   :  { %475 = vsyncpa [#allocation4], 1 }
 0x135   :  { %476 = vsyncpa [#allocation7], 1 }
 0x136   :  { %477 = vsyncpa [#allocation5], 1 }

</bundles_post_ra>
